<compile_context>
chip_gen: v7x
topology: tpu7x:2x2x1
jax: 0.10.0
libtpu: 0.0.40
codegen_flags: <defaults>
</compile_context>

<pallas_src>
import jax
import jax.numpy as jnp
import numpy as np
from jax.experimental import pallas as pl
from jax.experimental.pallas import tpu as pltpu


def _round_up(a, m):
    return ((a + m - 1) // m) * m


# ----------------------------------------------------------------------------- kernel
def _gru_fc_kernel(x_ref, lens_ref, wx_ref, wh_ref, b_ref, fc_ref,
                   y_ref,
                   h_ref, hs_ref, xp_ref):
    """One grid step == one (batch-tile, time-chunk).

    Refs:
      x_ref   : (Tc, Bt, D)   input chunk (time-major)
      lens_ref: (Bt, 1)       int32 sequence lengths
      wx_ref  : (D, 3Hp)      fused input weights  [r | z | n]
      wh_ref  : (Hp, 3Hp)     fused recurrent weights
      b_ref   : (2, 3Hp)      row 0 = b_ih, row 1 = b_hh (fused, padded)
      fc_ref  : (2, Hp)       row 0 = fc weight, row 1 col 0 = fc bias
      y_ref   : (Tc, Bt)      output probabilities for this chunk
      h_ref   : (Bt, Hp)      hidden-state carry (persists across time chunks)
      hs_ref  : (Tc, Bt, Hp)  masked hidden states of this chunk
      xp_ref  : (Tc, Bt, 3Hp) hoisted input projection of this chunk
    """
    c = pl.program_id(1)                      # time-chunk index (inner, sequential)
    Tc, Bt, Hp = hs_ref.shape
    G = 3 * Hp
    D = x_ref.shape[-1]

    @pl.when(c == 0)
    def _():
        h_ref[...] = jnp.zeros_like(h_ref)

    # ---- hoisted input projection: one big MXU matmul for the whole chunk ------
    x2d = x_ref[...].reshape(Tc * Bt, D)                                   # (Tc*Bt, D)
    proj = jnp.dot(x2d, wx_ref[...], preferred_element_type=jnp.float32)   # (Tc*Bt, 3Hp)
    xp_ref[...] = proj.reshape(Tc, Bt, G) + b_ref[0:1, :]                  # + b_ih

    lens = lens_ref[...]                       # (Bt, 1) int32
    base = c * Tc

    # ---- serial recurrence: one fused (Bt,Hp)x(Hp,3Hp) matmul per step ---------
    def step(i, carry):
        h = h_ref[...]                                                     # (Bt, Hp)
        gh = jnp.dot(h, wh_ref[...],
                     preferred_element_type=jnp.float32) + b_ref[1:2, :]   # (Bt, 3Hp)
        gx = xp_ref[i]                                                     # (Bt, 3Hp)
        r = jax.nn.sigmoid(gx[:, 0:Hp] + gh[:, 0:Hp])
        z = jax.nn.sigmoid(gx[:, Hp:2 * Hp] + gh[:, Hp:2 * Hp])
        n = jnp.tanh(gx[:, 2 * Hp:G] + r * gh[:, 2 * Hp:G])
        h_new = (1.0 - z) * n + z * h

        # pack_padded_sequence semantics: finished sequences do not advance;
        # their (pad_packed) output is a zero hidden state before fc.
        mask = (base + i) < lens                                           # (Bt, 1)
        h_ref[...] = jnp.where(mask, h_new, h)
        hs_ref[i] = jnp.where(mask, h_new, 0.0)
        return carry

    jax.lax.fori_loop(0, Tc, step, 0)

    # ---- fc + sigmoid, hoisted out of the recurrence (once per chunk) ----------
    logits = jnp.sum(hs_ref[...] * fc_ref[0:1, :], axis=-1) + fc_ref[1:2, 0:1]  # (Tc, Bt)
    y_ref[...] = jax.nn.sigmoid(logits).astype(y_ref.dtype)


# ----------------------------------------------------------------------------- wrapper
def predictor_forward_pallas(x, t, params, *, max_len=None, block_t=None):
    """x: (B, T, D) float32, t: (B,) int lengths.  Returns (B, max_len, 1).

    `max_len` must be a static Python int (pass int(max(t)) computed outside jit);
    defaults to T.
    """
    B, T, D = x.shape
    Hp, G = params["wh"].shape

    if max_len is None:
        max_len = T

    # Batch tiling: multiple of 8 sublanes; <=128 rows per tile. The batch-tile
    # grid axis is "parallel" so v7x can shard it across its two TensorCores.
    Bt = 128 if B > 128 else _round_up(B, 8)
    Bp = _round_up(B, Bt)
    nb = Bp // Bt

    # Time chunking: a single resident chunk for short sequences, else 128 steps.
    if block_t is None:
        Tc = _round_up(T, 8) if T <= 128 else 128
    else:
        Tc = block_t
    T_pad = _round_up(T, Tc)
    nc = T_pad // Tc

    # Pad batch/time; time-major layout so the serial loop slices the leading axis.
    x_pad = jnp.pad(x.astype(jnp.float32), ((0, Bp - B), (0, T_pad - T), (0, 0)))
    x_tbd = jnp.transpose(x_pad, (1, 0, 2))                     # (T_pad, Bp, D)
    lens = jnp.pad(t.astype(jnp.int32), (0, Bp - B)).reshape(Bp, 1)

    out = pl.pallas_call(
        _gru_fc_kernel,
        out_shape=jax.ShapeDtypeStruct((T_pad, Bp), jnp.float32),
        grid_spec=pltpu.PrefetchScalarGridSpec(
            num_scalar_prefetch=0,
            grid=(nb, nc),                                      # (batch-tile, time-chunk)
            in_specs=[
                pl.BlockSpec((Tc, Bt, D), lambda b, c: (c, b, 0)),   # x chunk
                pl.BlockSpec((Bt, 1), lambda b, c: (b, 0)),          # lengths
                pl.BlockSpec((D, G), lambda b, c: (0, 0)),           # fused Wx
                pl.BlockSpec((Hp, G), lambda b, c: (0, 0)),          # fused Wh
                pl.BlockSpec((2, G), lambda b, c: (0, 0)),           # fused biases
                pl.BlockSpec((2, Hp), lambda b, c: (0, 0)),          # fc weight+bias
            ],
            out_specs=pl.BlockSpec((Tc, Bt), lambda b, c: (c, b)),
            scratch_shapes=[
                pltpu.VMEM((Bt, Hp), jnp.float32),       # hidden-state carry
                pltpu.VMEM((Tc, Bt, Hp), jnp.float32),   # chunk hidden states
                pltpu.VMEM((Tc, Bt, G), jnp.float32),    # chunk input projection
            ],
        ),
        compiler_params=pltpu.CompilerParams(
            dimension_semantics=("parallel", "arbitrary")),
    )(x_tbd, lens, params["wx"], params["wh"], params["b"], params["fc"])

    y = jnp.transpose(out)[:B, :max_len]                        # (B, max_len)
    return y[:, :, None]


# ----------------------------------------------------------------------------- params
def init_params(key, input_dim, hidden_dim):
    """PyTorch-style init; returns fused/padded Pallas params and raw weights."""
    H, D = hidden_dim, input_dim
    bound = 1.0 / np.sqrt(H)
    ks = jax.random.split(key, 6)
    u = lambda k, shp: jax.random.uniform(k, shp, jnp.float32, -bound, bound)

    w_ih = u(ks[0], (3 * H, D))   # rows ordered [r, z, n] like PyTorch
    w_hh = u(ks[1], (3 * H, H))
    b_ih = u(ks[2], (3 * H,))
    b_hh = u(ks[3], (3 * H,))
    w_fc = u(ks[4], (1, H))
    b_fc = u(ks[5], (1,))
    raw = (w_ih, w_hh, b_ih, b_hh, w_fc, b_fc)

    Hp = _round_up(H, 128)        # pad every gate to a full lane tile
    G = 3 * Hp

    w_ih_np, w_hh_np = np.asarray(w_ih), np.asarray(w_hh)
    b_ih_np, b_hh_np = np.asarray(b_ih), np.asarray(b_hh)

    wx = np.zeros((D, G), np.float32)
    wh = np.zeros((Hp, G), np.float32)
    b = np.zeros((2, G), np.float32)
    for g in range(3):
        wx[:, g * Hp:g * Hp + H] = w_ih_np[g * H:(g + 1) * H, :].T
        wh[:H, g * Hp:g * Hp + H] = w_hh_np[g * H:(g + 1) * H, :].T
        b[0, g * Hp:g * Hp + H] = b_ih_np[g * H:(g + 1) * H]
        b[1, g * Hp:g * Hp + H] = b_hh_np[g * H:(g + 1) * H]

    fc = np.zeros((2, Hp), np.float32)
    fc[0, :H] = np.asarray(w_fc)[0]
    fc[1, 0] = float(np.asarray(b_fc)[0])

    params = {"wx": jnp.asarray(wx), "wh": jnp.asarray(wh),
              "b": jnp.asarray(b), "fc": jnp.asarray(fc)}
    return params, raw


# ----------------------------------------------------------------------------- pure-JAX reference
def predictor_forward_ref(x, t, raw, max_len):
    w_ih, w_hh, b_ih, b_hh, w_fc, b_fc = raw
    B, T, D = x.shape
    H = w_hh.shape[1]

    def cell(h, inp):
        xt, step = inp
        gx = xt @ w_ih.T + b_ih
        gh = h @ w_hh.T + b_hh
        r = jax.nn.sigmoid(gx[:, :H] + gh[:, :H])
        z = jax.nn.sigmoid(gx[:, H:2 * H] + gh[:, H:2 * H])
        n = jnp.tanh(gx[:, 2 * H:] + r * gh[:, 2 * H:])
        h_new = (1.0 - z) * n + z * h
        mask = (step < t)[:, None]
        return jnp.where(mask, h_new, h), jnp.where(mask, h_new, 0.0)

    _, outs = jax.lax.scan(cell, jnp.zeros((B, H), jnp.float32),
                           (jnp.swapaxes(x, 0, 1), jnp.arange(T)))
    outs = jnp.swapaxes(outs, 0, 1)                          # (B, T, H)
    y = jax.nn.sigmoid(outs @ w_fc.T + b_fc)                 # (B, T, 1)
    return y[:, :max_len, :]


# ----------------------------------------------------------------------------- main
if __name__ == "__main__":
    B, T, D, H = 2, 8, 4, 32

    key = jax.random.PRNGKey(0)
    kx, kp = jax.random.split(key)
    x = jax.random.normal(kx, (B, T, D), jnp.float32)
    t = jnp.array([8, 5], dtype=jnp.int32)       # sequence lengths (like the PyTorch `t`)

    params, raw = init_params(kp, D, H)

    # Static max length computed on the host (avoids tracer/host-sync issues under jit).
    tmax = int(np.max(np.asarray(t)))

    y = jax.block_until_ready(predictor_forward_pallas(x, t, params, max_len=tmax))
    y_ref = jax.block_until_ready(predictor_forward_ref(x, t, raw, max_len=tmax))

    np.testing.assert_allclose(np.asarray(y), np.asarray(y_ref), rtol=1e-5, atol=1e-5)
    assert y.shape == (B, tmax, 1)

    print("KERNEL_OK")
</pallas_src>

<mosaic_0001>
module attributes {stable_mosaic.version = 11 : i64} {
  func.func @_gru_fc_kernel(%arg0: i32, %arg1: i32, %arg2: memref<8x8x4xf32, #tpu.memory_space<vmem>>, %arg3: memref<8x1xi32, #tpu.memory_space<vmem>>, %arg4: memref<4x384xf32, #tpu.memory_space<vmem>>, %arg5: memref<128x384xf32, #tpu.memory_space<vmem>>, %arg6: memref<2x384xf32, #tpu.memory_space<vmem>>, %arg7: memref<2x128xf32, #tpu.memory_space<vmem>>, %arg8: memref<8x8xf32, #tpu.memory_space<vmem>>, %arg9: memref<8x128xf32, #tpu.memory_space<vmem>>, %arg10: memref<8x8x128xf32, #tpu.memory_space<vmem>>, %arg11: memref<8x8x384xf32, #tpu.memory_space<vmem>>) attributes {dimension_semantics = [#tpu.dimension_semantics<parallel>, #tpu.dimension_semantics<arbitrary>], iteration_bounds = array<i64: 1, 1>, scalar_prefetch = 0 : i64, scratch_operands = 3 : i64, tpu.core_type = #tpu.core_type<tc>, window_params = [{transform_indices = @transform_0, window_bounds = array<i64: 8, 8, 4>}, {transform_indices = @transform_1, window_bounds = array<i64: 8, 1>}, {pipeline_mode = #tpu.pipeline_mode<synchronous>, transform_indices = @transform_2, window_bounds = array<i64: 4, 384>}, {pipeline_mode = #tpu.pipeline_mode<synchronous>, transform_indices = @transform_3, window_bounds = array<i64: 128, 384>}, {pipeline_mode = #tpu.pipeline_mode<synchronous>, transform_indices = @transform_4, window_bounds = array<i64: 2, 384>}, {pipeline_mode = #tpu.pipeline_mode<synchronous>, transform_indices = @transform_5, window_bounds = array<i64: 2, 128>}, {transform_indices = @transform_6, window_bounds = array<i64: 8, 8>}]} {
    %c0_i32 = arith.constant 0 : i32
    %0 = arith.cmpi eq, %arg1, %c0_i32 : i32
    %1 = arith.extui %0 : i1 to i32
    %c0_i32_0 = arith.constant 0 : i32
    %2 = arith.cmpi ne, %1, %c0_i32_0 : i32
    scf.if %2 {
      %cst_25 = arith.constant 0.000000e+00 : f32
      %31 = vector.broadcast %cst_25 : f32 to vector<8x128xf32>
      %c0_26 = arith.constant 0 : index
      %c0_27 = arith.constant 0 : index
      %32 = vector.load %arg9[%c0_26, %c0_27] : memref<8x128xf32, #tpu.memory_space<vmem>>, vector<8x128xf32>
      tpu.vector_store %arg9[%c0_26, %c0_27], %31 {strides = array<i32>} : memref<8x128xf32, #tpu.memory_space<vmem>>, vector<8x128xf32>,
    } else {
    }
    %c0 = arith.constant 0 : index
    %c0_1 = arith.constant 0 : index
    %c0_2 = arith.constant 0 : index
    %3 = vector.load %arg2[%c0, %c0_1, %c0_2] : memref<8x8x4xf32, #tpu.memory_space<vmem>>, vector<8x8x4xf32>
    %4 = vector.shape_cast %3 : vector<8x8x4xf32> to vector<64x4xf32>
    %c0_3 = arith.constant 0 : index
    %c0_4 = arith.constant 0 : index
    %5 = vector.load %arg4[%c0_3, %c0_4] : memref<4x384xf32, #tpu.memory_space<vmem>>, vector<4x384xf32>
    %cst = arith.constant dense<0.000000e+00> : vector<64x384xf32>
    %6 = tpu.matmul %4, %5, %cst {dimension_numbers = #tpu.dot_dimension_numbers<[1], [0], [0], [1], [0, 0, 1, 1], [], []>} : vector<64x4xf32>, vector<4x384xf32>, vector<64x384xf32> -> vector<64x384xf32>
    %7 = vector.shape_cast %6 : vector<64x384xf32> to vector<8x8x384xf32>
    %c0_5 = arith.constant 0 : index
    %c0_6 = arith.constant 0 : index
    %8 = vector.load %arg6[%c0_5, %c0_6] : memref<2x384xf32, #tpu.memory_space<vmem>>, vector<1x384xf32>
    %9 = vector.shape_cast %8 : vector<1x384xf32> to vector<1x1x384xf32>
    %10 = vector.broadcast %9 : vector<1x1x384xf32> to vector<8x8x384xf32>
    %11 = arith.addf %7, %10 : vector<8x8x384xf32>
    %c0_7 = arith.constant 0 : index
    %c0_8 = arith.constant 0 : index
    %c0_9 = arith.constant 0 : index
    %12 = vector.load %arg11[%c0_7, %c0_8, %c0_9] : memref<8x8x384xf32, #tpu.memory_space<vmem>>, vector<8x8x384xf32>
    tpu.vector_store %arg11[%c0_7, %c0_8, %c0_9], %11 {strides = array<i32>} : memref<8x8x384xf32, #tpu.memory_space<vmem>>, vector<8x8x384xf32>,
    %c0_10 = arith.constant 0 : index
    %c0_11 = arith.constant 0 : index
    %13 = vector.load %arg3[%c0_10, %c0_11] : memref<8x1xi32, #tpu.memory_space<vmem>>, vector<8x1xi32>
    %c8_i32 = arith.constant 8 : i32
    %14 = arith.muli %arg1, %c8_i32 : i32
    %c0_i32_12 = arith.constant 0 : i32
    %c8_i32_13 = arith.constant 8 : i32
    %15 = arith.addi %c0_i32_12, %c8_i32_13 : i32
    %c1_i32 = arith.constant 1 : i32
    scf.for %arg12 = %c0_i32_12 to %15 step %c1_i32  : i32 {
      %c0_25 = arith.constant 0 : index
      %c0_26 = arith.constant 0 : index
      %31 = vector.load %arg9[%c0_25, %c0_26] : memref<8x128xf32, #tpu.memory_space<vmem>>, vector<8x128xf32>
      %c0_27 = arith.constant 0 : index
      %c0_28 = arith.constant 0 : index
      %32 = vector.load %arg5[%c0_27, %c0_28] : memref<128x384xf32, #tpu.memory_space<vmem>>, vector<128x384xf32>
      %cst_29 = arith.constant dense<0.000000e+00> : vector<8x384xf32>
      %33 = tpu.matmul %31, %32, %cst_29 {dimension_numbers = #tpu.dot_dimension_numbers<[1], [0], [0], [1], [0, 0, 1, 1], [], []>} : vector<8x128xf32>, vector<128x384xf32>, vector<8x384xf32> -> vector<8x384xf32>
      %c1_30 = arith.constant 1 : index
      %c0_31 = arith.constant 0 : index
      %34 = vector.load %arg6[%c1_30, %c0_31] : memref<2x384xf32, #tpu.memory_space<vmem>>, vector<1x384xf32>
      %35 = vector.broadcast %34 : vector<1x384xf32> to vector<8x384xf32>
      %36 = arith.addf %33, %35 : vector<8x384xf32>
      %37 = arith.index_cast %arg12 : i32 to index
      %c0_32 = arith.constant 0 : index
      %c0_33 = arith.constant 0 : index
      %38 = vector.load %arg11[%37, %c0_32, %c0_33] : memref<8x8x384xf32, #tpu.memory_space<vmem>>, vector<1x8x384xf32>
      %39 = vector.shape_cast %38 : vector<1x8x384xf32> to vector<8x384xf32>
      %40 = vector.extract_strided_slice %39 {offsets = [0, 0], sizes = [8, 128], strides = [1, 1]} : vector<8x384xf32> to vector<8x128xf32>
      %41 = vector.extract_strided_slice %36 {offsets = [0, 0], sizes = [8, 128], strides = [1, 1]} : vector<8x384xf32> to vector<8x128xf32>
      %42 = arith.addf %40, %41 : vector<8x128xf32>
      %43 = arith.negf %42 : vector<8x128xf32>
      %44 = math.exp %43 : vector<8x128xf32>
      %cst_34 = arith.constant 1.000000e+00 : f32
      %45 = vector.broadcast %cst_34 : f32 to vector<8x128xf32>
      %46 = arith.addf %45, %44 : vector<8x128xf32>
      %47 = arith.divf %45, %46 : vector<8x128xf32>
      %48 = vector.extract_strided_slice %39 {offsets = [0, 128], sizes = [8, 128], strides = [1, 1]} : vector<8x384xf32> to vector<8x128xf32>
      %49 = vector.extract_strided_slice %36 {offsets = [0, 128], sizes = [8, 128], strides = [1, 1]} : vector<8x384xf32> to vector<8x128xf32>
      %50 = arith.addf %48, %49 : vector<8x128xf32>
      %51 = arith.negf %50 : vector<8x128xf32>
      %52 = math.exp %51 : vector<8x128xf32>
      %cst_35 = arith.constant 1.000000e+00 : f32
      %53 = vector.broadcast %cst_35 : f32 to vector<8x128xf32>
      %54 = arith.addf %53, %52 : vector<8x128xf32>
      %55 = arith.divf %53, %54 : vector<8x128xf32>
      %56 = vector.extract_strided_slice %39 {offsets = [0, 256], sizes = [8, 128], strides = [1, 1]} : vector<8x384xf32> to vector<8x128xf32>
      %57 = vector.extract_strided_slice %36 {offsets = [0, 256], sizes = [8, 128], strides = [1, 1]} : vector<8x384xf32> to vector<8x128xf32>
      %58 = arith.mulf %47, %57 : vector<8x128xf32>
      %59 = arith.addf %56, %58 : vector<8x128xf32>
      %60 = math.tanh %59 : vector<8x128xf32>
      %cst_36 = arith.constant 1.000000e+00 : f32
      %61 = vector.broadcast %cst_36 : f32 to vector<8x128xf32>
      %62 = arith.subf %61, %55 : vector<8x128xf32>
      %63 = arith.mulf %62, %60 : vector<8x128xf32>
      %64 = arith.mulf %55, %31 : vector<8x128xf32>
      %65 = arith.addf %63, %64 : vector<8x128xf32>
      %66 = arith.addi %14, %arg12 : i32
      %67 = vector.broadcast %66 : i32 to vector<8x1xi32>
      %68 = arith.cmpi slt, %67, %13 : vector<8x1xi32>
      %69 = vector.shape_cast %68 : vector<8x1xi1> to vector<8x1xi1>
      %70 = vector.broadcast %69 : vector<8x1xi1> to vector<8x128xi1>
      %71 = arith.select %70, %65, %31 : vector<8x128xi1>, vector<8x128xf32>
      %c0_37 = arith.constant 0 : index
      %c0_38 = arith.constant 0 : index
      %72 = vector.load %arg9[%c0_37, %c0_38] : memref<8x128xf32, #tpu.memory_space<vmem>>, vector<8x128xf32>
      tpu.vector_store %arg9[%c0_37, %c0_38], %71 {strides = array<i32>} : memref<8x128xf32, #tpu.memory_space<vmem>>, vector<8x128xf32>,
      %cst_39 = arith.constant 0.000000e+00 : f32
      %73 = vector.shape_cast %68 : vector<8x1xi1> to vector<8x1xi1>
      %74 = vector.broadcast %73 : vector<8x1xi1> to vector<8x128xi1>
      %75 = vector.broadcast %cst_39 : f32 to vector<8x128xf32>
      %76 = arith.select %74, %65, %75 : vector<8x128xi1>, vector<8x128xf32>
      %77 = arith.index_cast %arg12 : i32 to index
      %c0_40 = arith.constant 0 : index
      %c0_41 = arith.constant 0 : index
      %78 = vector.load %arg10[%77, %c0_40, %c0_41] : memref<8x8x128xf32, #tpu.memory_space<vmem>>, vector<1x8x128xf32>
      %79 = vector.shape_cast %78 : vector<1x8x128xf32> to vector<8x128xf32>
      %80 = vector.shape_cast %76 : vector<8x128xf32> to vector<1x8x128xf32>
      tpu.vector_store %arg10[%77, %c0_40, %c0_41], %80 {strides = array<i32>} : memref<8x8x128xf32, #tpu.memory_space<vmem>>, vector<1x8x128xf32>,
    }
    %c8_i32_14 = arith.constant 8 : i32
    %c0_15 = arith.constant 0 : index
    %c0_16 = arith.constant 0 : index
    %c0_17 = arith.constant 0 : index
    %16 = vector.load %arg10[%c0_15, %c0_16, %c0_17] : memref<8x8x128xf32, #tpu.memory_space<vmem>>, vector<8x8x128xf32>
    %c0_18 = arith.constant 0 : index
    %c0_19 = arith.constant 0 : index
    %17 = vector.load %arg7[%c0_18, %c0_19] : memref<2x128xf32, #tpu.memory_space<vmem>>, vector<1x128xf32>
    %18 = vector.shape_cast %17 : vector<1x128xf32> to vector<1x1x128xf32>
    %19 = vector.broadcast %18 : vector<1x1x128xf32> to vector<8x8x128xf32>
    %20 = arith.mulf %16, %19 : vector<8x8x128xf32>
    %cst_20 = arith.constant dense<0.000000e+00> : vector<8x8xf32>
    %21 = vector.multi_reduction <add>, %20, %cst_20 [2] : vector<8x8x128xf32> to vector<8x8xf32>
    %c1 = arith.constant 1 : index
    %c0_21 = arith.constant 0 : index
    %22 = vector.load %arg7[%c1, %c0_21] : memref<2x128xf32, #tpu.memory_space<vmem>>, vector<1x1xf32>
    %23 = vector.broadcast %22 : vector<1x1xf32> to vector<8x8xf32>
    %24 = arith.addf %21, %23 : vector<8x8xf32>
    %25 = arith.negf %24 : vector<8x8xf32>
    %26 = math.exp %25 : vector<8x8xf32>
    %cst_22 = arith.constant 1.000000e+00 : f32
    %27 = vector.broadcast %cst_22 : f32 to vector<8x8xf32>
    %28 = arith.addf %27, %26 : vector<8x8xf32>
    %29 = arith.divf %27, %28 : vector<8x8xf32>
    %c0_23 = arith.constant 0 : index
    %c0_24 = arith.constant 0 : index
    %30 = vector.load %arg8[%c0_23, %c0_24] : memref<8x8xf32, #tpu.memory_space<vmem>>, vector<8x8xf32>
    tpu.vector_store %arg8[%c0_23, %c0_24], %29 {strides = array<i32>} : memref<8x8xf32, #tpu.memory_space<vmem>>, vector<8x8xf32>,
    return
  }
  func.func @transform_0(%arg0: i32, %arg1: i32) -> (i32, i32, i32) {
    %c0_i32 = arith.constant 0 : i32
    %c0_i32_0 = arith.constant 0 : i32
    return %arg1, %arg0, %c0_i32 : i32, i32, i32
  }
  func.func @transform_1(%arg0: i32, %arg1: i32) -> (i32, i32) {
    %c0_i32 = arith.constant 0 : i32
    %c0_i32_0 = arith.constant 0 : i32
    return %arg0, %c0_i32 : i32, i32
  }
  func.func @transform_2(%arg0: i32, %arg1: i32) -> (i32, i32) {
    %c0_i32 = arith.constant 0 : i32
    %c0_i32_0 = arith.constant 0 : i32
    %c0_i32_1 = arith.constant 0 : i32
    return %c0_i32, %c0_i32_0 : i32, i32
  }
  func.func @transform_3(%arg0: i32, %arg1: i32) -> (i32, i32) {
    %c0_i32 = arith.constant 0 : i32
    %c0_i32_0 = arith.constant 0 : i32
    %c0_i32_1 = arith.constant 0 : i32
    return %c0_i32, %c0_i32_0 : i32, i32
  }
  func.func @transform_4(%arg0: i32, %arg1: i32) -> (i32, i32) {
    %c0_i32 = arith.constant 0 : i32
    %c0_i32_0 = arith.constant 0 : i32
    %c0_i32_1 = arith.constant 0 : i32
    return %c0_i32, %c0_i32_0 : i32, i32
  }
  func.func @transform_5(%arg0: i32, %arg1: i32) -> (i32, i32) {
    %c0_i32 = arith.constant 0 : i32
    %c0_i32_0 = arith.constant 0 : i32
    %c0_i32_1 = arith.constant 0 : i32
    return %c0_i32, %c0_i32_0 : i32, i32
  }
  func.func @transform_6(%arg0: i32, %arg1: i32) -> (i32, i32) {
    %c0_i32 = arith.constant 0 : i32
    return %arg1, %arg0 : i32, i32
  }
}

</mosaic_0001>

<bundles_post_ra>
// kernel: tpu_custom_call.1
= control target key start
LH: loop header
LB: loop body
LE: loop exit
PB: predicated region body
PF: predicated region fallthrough
CT: control target
= control target key end

     0   :  { %11 = vsyncpa [#allocation6], 0  ;;  %s1292_s0 = inlined_call_operand.vmem [shape: f32[8,8,4], index: 0, kind: input, shape index: {}]   ;;  %s1293_s1 = inlined_call_operand.vmem [shape: s32[8,1], index: 1, kind: input, shape index: {}]   ;;  %s1294_s2 = inlined_call_operand.vmem [shape: f32[4,384], index: 2, kind: input, shape index: {}]   ;;  %s1295_s3 = inlined_call_operand.hbm [shape: f32[128,384], index: 3, kind: input, shape index: {}]   ;;  %s1296_s4 = inlined_call_operand.vmem [shape: f32[2,384], index: 4, kind: input, shape index: {}]   ;;  %s1297_s5 = inlined_call_operand.vmem [shape: f32[2,128], index: 5, kind: input, shape index: {}]   ;;  %s1298_s6 = inlined_call_operand.hbm [shape: f32[8,8], index: 6, kind: output, shape index: {}]  }
   0x1   :  { %12 = vsyncpa [#allocation7], 0  ;;  %s1095_s21 = smov [#allocation5]   ;;  %s1039_s25 = scalar_lea.hbm %s1295_s3, 6144 }
   0x2   :  { %s24_s22 = sshll.u32 %s1095_s21, 4  ;;  %p1040_p0 = scmp.ne.s32.totalorder %s1295_s3, %s1039_s25  ;;  %s25_s22 = int_to_ptr.vmem [resolvable:$true] %s24_s22 }
   0x3   :  { %p1043_p1 = scmp.lt.u32.totalorder %s1039_s25, %s1295_s3 }
   0x5   :  { %p1045_p2 = pnand %p1043_p1, %p1040_p0 }
   0x7   :  { %1048 = shalt.err (!%p1045_p2)
}
   0x8   :  { %s1049_s30 = scalar_lea.vmem %s25_s22, 6144  ;;  %p1054_p4 = scmp.lt.s32.totalorder %s25_s22, %s25_s22 }
   0x9   :  { %p1050_p3 = scmp.ne.s32.totalorder %s25_s22, %s1049_s30  ;;  %p1055_p5 = scmp.lt.s32.totalorder %s1049_s30, %s1049_s30 }
   0xb   :  { %p1056_p6 = por %p1055_p5, %p1054_p4 }
   0xd   :  { %p1057_p7 = pnand %p1056_p6, %p1050_p3 }
   0xf   :  { %1060 = shalt.err (!%p1057_p7)
}
  0x10   :  { %s1096_s7 = smov 384   ;;  %s1097_s8 = smov 24  }
  0x11   :  { %30 = dma.hbm_to_vmem [thread:$0]  %s1295_s3, 6144, %s25_s22, [#allocation6], %s1096_s7, %s1096_s7, %s1097_s8  }
  0x12   :  { %1087 = dma.done.wait [#allocation6], 6144  }
  0x13   :  { %1088 = vsyncadd [#allocation6], 4294961152  ;;  %v1098_v0 = vmov 0.0   ;;  %v1154_v1 = vld [vmem:[%s1293_s1] sm:$0xff]  ;;  %vm81_vm0 = vcmask 1043456   ;;  %vm56_vm1 = vcmask 31744   ;;  %v308_v13 = vlaneseq }
  0x14   :  { %42 = vst [vmem:[#allocation2] sm:$0xff] %v1098_v0  ;;  %152 = vmatprep.mubr.f32.mxu0 %v1098_v0  ;;  %188 = vmatprep.mubr.f32.mxu1 %v1098_v0  ;;  %v51_v2 = vld [vmem:[%s1294_s2] sm:$0xff]  ;;  %v49_v5 = vld [vmem:[%s1292_s0 + $0x30] sm:$0xff]  ;;  %v52_v6 = vld [vmem:[%s1294_s2 + $0x8] sm:$0xf] }
  0x15   :  { %v55_v3 = vcombine.high %v51_v2, %v51_v2  ;;  %v43_v4 = vld [vmem:[%s1292_s0] sm:$0xff]  ;;  %v44_v7 = vld [vmem:[%s1292_s0 + $0x8] sm:$0xff]  ;;  %v50_v8 = vld [vmem:[%s1292_s0 + $0x38] sm:$0xff]  ;;  %v1209_v14 = vshrl.u32 %v308_v13, 7 }
  0x16   :  { %v45_v9 = vld [vmem:[%s1292_s0 + $0x10] sm:$0xff]  ;;  %v46_v10 = vld [vmem:[%s1292_s0 + $0x18] sm:$0xff]  ;;  %v47_v11 = vld [vmem:[%s1292_s0 + $0x20] sm:$0xff] }
  0x17   :  { %809 = vmatprep.subr.msk.mxu0 %vm81_vm0, %v55_v3  ;;  %974 = vmatprep.subr.msk.mxu1 %vm81_vm0, %v55_v3  ;;  %v48_v12 = vld [vmem:[%s1292_s0 + $0x28] sm:$0xff]  ;;  %v310_v15 = vsub.s32 0, %v1209_v14  ;;  %v306_v16 = vld [vmem:[%s1296_s4] ss:$2 sm:$0x7]  ;;  %v314_v17 = vsub.s32 1, %v1209_v14 }
  0x18   :  { %810 = vmatpush1.msk.msra.mxu0 %vm81_vm0, %v51_v2  ;;  %975 = vmatpush1.msk.msra.mxu1 %vm81_vm0, %v51_v2  ;;  %v318_v26 = vsub.s32 2, %v1209_v14  ;;  %s1243_s0 = smov 0  }
  0x19   :  { %811 = vmatmul.mubr.msk.f32.vlgmr.msra.gmra.mrb[0].mxu0 %vm56_vm1, %v43_v4  ;;  %817 = vmatmul.mubr.msk.f32.vlgmr.msra.gmra.mrb[0].mxu1 %vm56_vm1, %v49_v5  ;;  %v1218_v18 = vrot.slane %v306_v16, %v310_v15  ;;  %v1222_v19 = vrot.slane %v306_v16, %v314_v17 }
  0x1a   :  { %869 = vmatprep.subr.msk.mxu1 %vm81_vm0, %v52_v6  ;;  %158 = vmatprep.mubr.f32.mxu0 %v1098_v0  ;;  %v319_v35 = vrot.slane %v306_v16, %v318_v26 }
  0x1b   :  { %870 = vmatpush3.msk.msra.mxu1 %vm81_vm0, %v52_v6  ;;  %194 = vmatprep.mubr.f32.mxu1 %v1098_v0 }
  0x1d   :  { %812 = vmatmul.mubr.msk.f32.gmra.mrb[2].mxu0 %vm56_vm1, %v44_v7  ;;  %818 = vmatmul.mubr.msk.f32.gmra.mrb[2].mxu1 %vm56_vm1, %v50_v8 }
  0x1e   :  { %164 = vmatprep.mubr.f32.mxu0 %v1098_v0  ;;  %871 = vmatprep.mubr.msk.f32.mxu1 %vm56_vm1, %v43_v4 }
  0x21   :  { %813 = vmatmul.mubr.msk.f32.gmra.mrb[4].mxu0 %vm56_vm1, %v45_v9  ;;  %872 = vmatmul.mubr.msk.f32.vlgmr.msra.gmra.mrb[4].mxu1 %vm56_vm1, %v44_v7 }
  0x22   :  { %170 = vmatprep.mubr.f32.mxu0 %v1098_v0  ;;  %874 = vmatprep.mubr.msk.f32.mxu1 %vm56_vm1, %v45_v9 }
  0x25   :  { %814 = vmatmul.mubr.msk.f32.gmra.mrb[6].mxu0 %vm56_vm1, %v46_v10  ;;  %875 = vmatmul.mubr.msk.f32.gmra.mrb[6].mxu1 %vm56_vm1, %v46_v10 }
  0x26   :  { %176 = vmatprep.mubr.f32.mxu0 %v1098_v0  ;;  %877 = vmatprep.mubr.msk.f32.mxu1 %vm56_vm1, %v47_v11 }
  0x29   :  { %815 = vmatmul.mubr.msk.f32.gmra.mrb[8].mxu0 %vm56_vm1, %v47_v11  ;;  %878 = vmatmul.mubr.msk.f32.gmra.mrb[8].mxu1 %vm56_vm1, %v48_v12 }
  0x2a   :  { %182 = vmatprep.mubr.f32.mxu0 %v1098_v0  ;;  %880 = vmatprep.mubr.msk.f32.mxu1 %vm56_vm1, %v49_v5 }
  0x2d   :  { %816 = vmatmul.mubr.msk.f32.gmra.mrb[10].mxu0 %vm56_vm1, %v48_v12  ;;  %881 = vmatmul.mubr.msk.f32.gmra.mrb[10].mxu1 %vm56_vm1, %v50_v8 }
  0xec   :  { %v154_v20 = vpop.f32.mrb[0].mxu0  ;;  %v190_v21 = vpop.f32.mrb[0].mxu1 }
  0xed   :  { %v323_v22 = vadd.f32 %v1218_v18, %v154_v20  ;;  %v341_v23 = vadd.f32 %v1218_v18, %v190_v21  ;;  %v156_v24 = vpop.f32.mrb[1].mxu0  ;;  %v192_v25 = vpop.f32.mrb[1].mxu1 }
  0xee   :  { %v324_v27 = vadd.f32 %v1222_v19, %v156_v24  ;;  %v342_v28 = vadd.f32 %v1222_v19, %v192_v25 }
  0xef   :  { %347 = vst [vmem:[#allocation4] sm:$0xff] %v323_v22  ;;  %365 = vst [vmem:[#allocation4 + $0x90] sm:$0xff] %v341_v23 }
  0xf0   :  { %348 = vst [vmem:[#allocation4 + $0x8] sm:$0xff] %v324_v27  ;;  %366 = vst [vmem:[#allocation4 + $0x98] sm:$0xff] %v342_v28  ;;  %v160_v29 = vpop.f32.mrb[2].mxu0  ;;  %v196_v30 = vpop.f32.mrb[2].mxu1 }
  0xf1   :  { %v326_v31 = vadd.f32 %v1218_v18, %v160_v29  ;;  %v344_v32 = vadd.f32 %v1218_v18, %v196_v30  ;;  %v162_v33 = vpop.f32.mrb[3].mxu0  ;;  %v198_v34 = vpop.f32.mrb[3].mxu1 }
  0xf2   :  { %v327_v36 = vadd.f32 %v1222_v19, %v162_v33  ;;  %v345_v37 = vadd.f32 %v1222_v19, %v198_v34 }
  0xf3   :  { %350 = vst [vmem:[#allocation4 + $0x18] sm:$0xff] %v326_v31  ;;  %368 = vst [vmem:[#allocation4 + $0xa8] sm:$0xff] %v344_v32 }
  0xf4   :  { %351 = vst [vmem:[#allocation4 + $0x20] sm:$0xff] %v327_v36  ;;  %369 = vst [vmem:[#allocation4 + $0xb0] sm:$0xff] %v345_v37  ;;  %v166_v38 = vpop.f32.mrb[4].mxu0  ;;  %v873_v39 = vpop.f32.mrb[4].mxu1 }
  0xf5   :  { %v329_v40 = vadd.f32 %v1218_v18, %v166_v38  ;;  %v328_v41 = vadd.f32 %v873_v39, %v319_v35  ;;  %v168_v42 = vpop.f32.mrb[5].mxu0  ;;  %v267_v43 = vpop.f32.mrb[5].mxu1 }
  0xf6   :  { %v330_v44 = vadd.f32 %v1222_v19, %v168_v42  ;;  %v325_v45 = vadd.f32 %v319_v35, %v267_v43 }
  0xf7   :  { %353 = vst [vmem:[#allocation4 + $0x30] sm:$0xff] %v329_v40  ;;  %352 = vst [vmem:[#allocation4 + $0x28] sm:$0xff] %v328_v41 }
  0xf8   :  { %354 = vst [vmem:[#allocation4 + $0x38] sm:$0xff] %v330_v44  ;;  %349 = vst [vmem:[#allocation4 + $0x10] sm:$0xff] %v325_v45  ;;  %v172_v46 = vpop.f32.mrb[6].mxu0  ;;  %v876_v47 = vpop.f32.mrb[6].mxu1 }
  0xf9   :  { %v332_v48 = vadd.f32 %v1218_v18, %v172_v46  ;;  %v334_v49 = vadd.f32 %v876_v47, %v319_v35  ;;  %v174_v50 = vpop.f32.mrb[7].mxu0  ;;  %v277_v51 = vpop.f32.mrb[7].mxu1 }
  0xfa   :  { %v333_v52 = vadd.f32 %v1222_v19, %v174_v50  ;;  %v331_v53 = vadd.f32 %v319_v35, %v277_v51 }
  0xfb   :  { %356 = vst [vmem:[#allocation4 + $0x48] sm:$0xff] %v332_v48  ;;  %358 = vst [vmem:[#allocation4 + $0x58] sm:$0xff] %v334_v49 }
  0xfc   :  { %357 = vst [vmem:[#allocation4 + $0x50] sm:$0xff] %v333_v52  ;;  %355 = vst [vmem:[#allocation4 + $0x40] sm:$0xff] %v331_v53  ;;  %v178_v54 = vpop.f32.mrb[8].mxu0  ;;  %v879_v55 = vpop.f32.mrb[8].mxu1 }
  0xfd   :  { %v335_v56 = vadd.f32 %v1218_v18, %v178_v54  ;;  %v340_v57 = vadd.f32 %v879_v55, %v319_v35  ;;  %v180_v58 = vpop.f32.mrb[9].mxu0  ;;  %v287_v59 = vpop.f32.mrb[9].mxu1 }
  0xfe   :  { %v336_v60 = vadd.f32 %v1222_v19, %v180_v58  ;;  %v337_v61 = vadd.f32 %v319_v35, %v287_v59 }
  0xff   :  { %359 = vst [vmem:[#allocation4 + $0x60] sm:$0xff] %v335_v56  ;;  %364 = vst [vmem:[#allocation4 + $0x88] sm:$0xff] %v340_v57 }
 0x100   :  { %360 = vst [vmem:[#allocation4 + $0x68] sm:$0xff] %v336_v60  ;;  %361 = vst [vmem:[#allocation4 + $0x70] sm:$0xff] %v337_v61  ;;  %v184_v62 = vpop.f32.mrb[10].mxu0  ;;  %v882_v63 = vpop.f32.mrb[10].mxu1 }
 0x101   :  { %v338_v0 = vadd.f32 %v1218_v18, %v184_v62  ;;  %v346_v2 = vadd.f32 %v882_v63, %v319_v35  ;;  %v186_v3 = vpop.f32.mrb[11].mxu0  ;;  %v297_v4 = vpop.f32.mrb[11].mxu1 }
 0x102   :  { %v339_v5 = vadd.f32 %v1222_v19, %v186_v3  ;;  %v343_v6 = vadd.f32 %v319_v35, %v297_v4 }
 0x103   :  { %362 = vst [vmem:[#allocation4 + $0x78] sm:$0xff] %v338_v0  ;;  %370 = vst [vmem:[#allocation4 + $0xb8] sm:$0xff] %v346_v2 }
 0x104   :  { %363 = vst [vmem:[#allocation4 + $0x80] sm:$0xff] %v339_v5  ;;  %367 = vst [vmem:[#allocation4 + $0xa0] sm:$0xff] %v343_v6 }
 0x105 LB: > { %v381_v7 = vld [vmem:[#allocation5 + $0x8] sm:$0xff]  ;;  %v384_v8 = vld [vmem:[#allocation5 + $0x20] sm:$0xff]  ;;  %v383_v11 = vld [vmem:[#allocation5 + $0x18] sm:$0xff]  ;;  %v1099_v18 = vmov 0.0|0.0   ;;  %v1100_v19 = vmov 0.0   ;;  %vm1101_vm2 = vmmov 0   ;;  %v615_v27 = vstv %s1093_s0  ;;  %s1093_s0 = sphi %s1243_s0, %s378_s0  }
 0x106   : > { %v380_v9 = vld [vmem:[#allocation5] sm:$0xff]  ;;  %v918_v10 = vpack.c.bf16 %v384_v8, %v381_v7  ;;  %v387_v12 = vld [vmem:[#allocation5 + $0x38] sm:$0xff]  ;;  %v390_v16 = vld [vmem:[#allocation5 + $0x50] sm:$0xff]  ;;  %950 = vmatprep.subr.bf16.mxu1 %v1099_v18  ;;  %510 = vmatprep.mubr.f32.mxu0 %v1100_v19  ;;  %v1102_v25 = vmov 0   ;;  %vm616_vm3 = vcmp.lt.s32.totalorder %v615_v27, %v1154_v1  ;;  %s842_s8 = smul.u32 24, %s1093_s0  ;;  %s832_s12 = sshll.u32 %s1093_s0, 3 }
 0x107   : > { %v920_v20 = vpack.c.bf16 %v383_v11, %v380_v9  ;;  %v922_v21 = vpack.c.bf16 %v390_v16, %v387_v12  ;;  %v386_v22 = vld [vmem:[#allocation5 + $0x30] sm:$0xff]  ;;  %v389_v23 = vld [vmem:[#allocation5 + $0x48] sm:$0xff]  ;;  %915 = vmatprep.mubr.msk.f32.mxu1 %vm1101_vm2, %v1100_v19  ;;  %996 = vset.pattern.permute.xlu0 %v1102_v25  ;;  %v396_v28 = vld [vmem:[#allocation5 + $0x80] sm:$0xff]  ;;  %v617_v30 = vsel %vm616_vm3, 1, %v1102_v25  ;;  %s626_s13 = scalar_lea.vmem [#allocation3], %s832_s12  ;;  %s378_s0 = sadd.s32 1, %s1093_s0  }
 0x108   : > { %v393_v24 = vld [vmem:[#allocation5 + $0x68] sm:$0xff]  ;;  %919 = vmatprep.subr.bf16.mxu0 %v918_v10  ;;  %v924_v29 = vpack.c.bf16 %v389_v23, %v386_v22  ;;  %v392_v32 = vld [vmem:[#allocation5 + $0x60] sm:$0xff]  ;;  %v395_v33 = vld [vmem:[#allocation5 + $0x78] sm:$0xff]  ;;  %619 = vperm.xlu0 %996, %v617_v30   ;;  %s589_s11 = scalar_lea.vmem [#allocation4], %s842_s8  ;;  %p375_p8 = scmp.ge.s32.totalorder %s378_s0, 8  }
 0x109   : > { %921 = vmatpush1.bf16.msra.mxu0 %v920_v20  ;;  %v926_v31 = vpack.c.bf16 %v396_v28, %v393_v24  ;;  %v399_v34 = vld [vmem:[#allocation5 + $0x98] sm:$0xff]  ;;  %v402_v35 = vld [vmem:[#allocation5 + $0xb0] sm:$0xff]  ;;  %v928_v36 = vpack.c.bf16 %v395_v33, %v392_v32  ;;  %v401_v39 = vld [vmem:[#allocation5 + $0xa8] sm:$0xff]  ;;  %vm768_vm5 = vcmask (%p375_p8), 1041409   ;;  %vm770_vm6 = vcmask (%p375_p8), 1042434  }
 0x10a   : > { %923 = vmatprep.subr.bf16.mxu0 %v922_v21  ;;  %v930_v37 = vpack.c.bf16 %v402_v35, %v399_v34  ;;  %v398_v38 = vld [vmem:[#allocation5 + $0x90] sm:$0xff]  ;;  %v405_v40 = vld [vmem:[#allocation5 + $0xc8] sm:$0xff]  ;;  %v408_v41 = vld [vmem:[#allocation5 + $0xe0] sm:$0xff]  ;;  %vm772_vm7 = vcmask (%p375_p8), 1043459   ;;  %vm774_vm8 = vcmask (%p375_p8), 1044484   ;;  %vm776_vm9 = vcmask (%p375_p8), 1045509  }
 0x10b   : > { %v382_v42 = vld [vmem:[#allocation5 + $0x10] sm:$0xff]  ;;  %v385_v43 = vld [vmem:[#allocation5 + $0x28] sm:$0xff]  ;;  %v388_v45 = vld [vmem:[#allocation5 + $0x40] sm:$0xff]  ;;  %v932_v46 = vpack.c.bf16 %v401_v39, %v398_v38  ;;  %v934_v48 = vpack.c.bf16 %v408_v41, %v405_v40  ;;  %vm778_vm10 = vcmask (%p375_p8), 1046534   ;;  %vm780_vm11 = vcmask (%p375_p8), 1047559  }
 0x10c   : > { %v951_v44 = vpack.c.bf16 %v385_v43, %v382_v42  ;;  %v391_v47 = vld [vmem:[#allocation5 + $0x58] sm:$0xff]  ;;  %v404_v49 = vld [vmem:[#allocation5 + $0xc0] sm:$0xff]  ;;  %v414_v53 = vld [vmem:[#allocation5 + $0x110] sm:$0xff]  ;;  %vm783_vm12 = vcmask (%p375_p8), 64512  }
 0x10d   : > { %925 = vmatpush1.bf16.msra.mxu0 %v924_v29  ;;  %v407_v50 = vld [vmem:[#allocation5 + $0xd8] sm:$0xff]  ;;  %v954_v52 = vpack.c.bf16 %v391_v47, %v388_v45  ;;  %v394_v54 = vld [vmem:[#allocation5 + $0x70] sm:$0xff]  ;;  %v397_v55 = vld [vmem:[#allocation5 + $0x88] sm:$0xff] }
 0x10e   : > { %927 = vmatprep.subr.bf16.mxu0 %v926_v31  ;;  %v411_v51 = vld [vmem:[#allocation5 + $0xf8] sm:$0xff]  ;;  %952 = vmatpush3.bf16.msra.mxu1 %v951_v44  ;;  %v936_v56 = vpack.c.bf16 %v407_v50, %v404_v49  ;;  %v410_v58 = vld [vmem:[#allocation5 + $0xf0] sm:$0xff]  ;;  %v413_v59 = vld [vmem:[#allocation5 + $0x108] sm:$0xff]  ;;  %v957_v61 = vpack.c.bf16 %v397_v55, %v394_v54 }
 0x10f   : > { %953 = vmatprep.subr.bf16.mxu1 %v1099_v18  ;;  %v938_v57 = vpack.c.bf16 %v414_v53, %v411_v51  ;;  %v417_v60 = vld [vmem:[#allocation5 + $0x128] sm:$0xff]  ;;  %v420_v62 = vld [vmem:[#allocation5 + $0x140] sm:$0xff]  ;;  %v403_v0 = vld [vmem:[#allocation5 + $0xb8] sm:$0xff]  ;;  %v940_v2 = vpack.c.bf16 %v413_v59, %v410_v58 }
 0x110   : > { %v400_v63 = vld [vmem:[#allocation5 + $0xa0] sm:$0xff]  ;;  %v942_v3 = vpack.c.bf16 %v420_v62, %v417_v60  ;;  %v419_v5 = vld [vmem:[#allocation5 + $0x138] sm:$0xff]  ;;  %v426_v8 = vld [vmem:[#allocation5 + $0x170] sm:$0xff] }
 0x111   : > { %929 = vmatpush1.bf16.msra.mxu0 %v928_v36  ;;  %v416_v4 = vld [vmem:[#allocation5 + $0x120] sm:$0xff]  ;;  %v423_v6 = vld [vmem:[#allocation5 + $0x158] sm:$0xff]  ;;  %v960_v7 = vpack.c.bf16 %v403_v0, %v400_v63  ;;  %v406_v9 = vld [vmem:[#allocation5 + $0xd0] sm:$0xff] }
 0x112   : > { %931 = vmatprep.subr.bf16.mxu0 %v930_v37  ;;  %955 = vmatpush3.bf16.msra.mxu1 %v954_v52  ;;  %v409_v10 = vld [vmem:[#allocation5 + $0xe8] sm:$0xff]  ;;  %v944_v11 = vpack.c.bf16 %v419_v5, %v416_v4  ;;  %v946_v12 = vpack.c.bf16 %v426_v8, %v423_v6  ;;  %v422_v16 = vld [vmem:[#allocation5 + $0x150] sm:$0xff]  ;;  %v412_v21 = vld [vmem:[#allocation5 + $0x100] sm:$0xff] }
 0x113   : > { %956 = vmatprep.subr.bf16.mxu1 %v1099_v18  ;;  %v425_v19 = vld [vmem:[#allocation5 + $0x168] sm:$0xff]  ;;  %v963_v20 = vpack.c.bf16 %v409_v10, %v406_v9  ;;  %v415_v22 = vld [vmem:[#allocation5 + $0x118] sm:$0xff]  ;;  %v418_v25 = vld [vmem:[#allocation5 + $0x130] sm:$0xff] }
 0x114   : > { %v948_v23 = vpack.c.bf16 %v425_v19, %v422_v16  ;;  %v966_v24 = vpack.c.bf16 %v415_v22, %v412_v21  ;;  %v421_v27 = vld [vmem:[#allocation5 + $0x148] sm:$0xff]  ;;  %v379_v28 = vld [vmem:[#allocation2] sm:$0xff]  ;;  %v424_v30 = vld [vmem:[#allocation5 + $0x160] sm:$0xff] }
 0x115   : > { %933 = vmatpush1.bf16.msra.mxu0 %v932_v46  ;;  %v969_v29 = vpack.c.bf16 %v421_v27, %v418_v25  ;;  %v427_v31 = vld [vmem:[#allocation5 + $0x178] sm:$0xff]  ;;  %v591_v41 = vld [vmem:[%s589_s11 + $0x8] sm:$0xff]  ;;  %v592_v54 = vld [vmem:[%s589_s11 + $0x10] sm:$0xff] }
 0x116   : > { %935 = vmatprep.subr.bf16.mxu0 %v934_v48  ;;  %958 = vmatpush3.bf16.msra.mxu1 %v957_v61  ;;  %v972_v32 = vpack.c.bf16 %v427_v31, %v424_v30  ;;  %v828_v33 = vld [vmem:[%s1296_s4 + $0x1] ss:$2 sm:$0x7]  ;;  %v833_v4 = vld [vmem:[%s1297_s5] ss:$0 sm:$0xff] (%p375_p8) }
 0x117   : > { %959 = vmatprep.subr.bf16.mxu1 %v1099_v18  ;;  %v434_v34 = vrot.slane %v828_v33, %v310_v15  ;;  %v438_v35 = vrot.slane %v828_v33, %v314_v17  ;;  %v590_v37 = vld [vmem:[%s589_s11] sm:$0xff]  ;;  %v442_v49 = vrot.slane %v828_v33, %v318_v26 }
 0x119   : > { %937 = vmatpush1.bf16.msra.mxu0 %v936_v56 }
 0x11a   : > { %939 = vmatprep.subr.bf16.mxu0 %v938_v57  ;;  %961 = vmatpush3.bf16.msra.mxu1 %v960_v7 }
 0x11b   : > { %962 = vmatprep.subr.bf16.mxu1 %v1099_v18 }
 0x11d   : > { %941 = vmatpush1.bf16.msra.mxu0 %v940_v2 }
 0x11e   : > { %943 = vmatprep.subr.bf16.mxu0 %v942_v3  ;;  %964 = vmatpush3.bf16.msra.mxu1 %v963_v20 }
 0x11f   : > { %965 = vmatprep.subr.bf16.mxu1 %v1099_v18 }
 0x121   : > { %945 = vmatpush1.bf16.msra.mxu0 %v944_v11 }
 0x122   : > { %947 = vmatprep.subr.bf16.mxu0 %v946_v12  ;;  %967 = vmatpush3.bf16.msra.mxu1 %v966_v24  ;;  %v665_v12 = vld [vmem:[%s1297_s5 + $0x1] sm:$0x1] (%p375_p8)  ;;  %s1103_s5 = smov (%p375_p8), [#allocation8]  }
 0x123   : > { %968 = vmatprep.subr.bf16.mxu1 %v1099_v18  ;;  %976 = vpush (%p375_p8), %v665_v12  ;;  %s791_s17 = sshll.u32 (%p375_p8), %s1103_s5, 4  ;;  %s792_s17 = int_to_ptr.vmem [resolvable:$true] %s791_s17 }
 0x124   :  { %s1061_s1 = scalar_lea.vmem (%p375_p8), %s792_s17, 128  ;;  %p1066_p10 = scmp.lt.s32.totalorder (%p375_p8), %s792_s17, %s792_s17 }
 0x125   : > { %949 = vmatpush1.bf16.msra.mxu0 %v948_v23  ;;  %p1062_p9 = scmp.ne.s32.totalorder (%p375_p8), %s792_s17, %s1061_s1  ;;  %p1067_p11 = scmp.lt.s32.totalorder (%p375_p8), %s1061_s1, %s1061_s1 }
 0x126   : > { %970 = vmatpush3.bf16.msra.mxu1 %v969_v29 }
 0x127   : > { %971 = vmatprep.subr.bf16.mxu1 %v1099_v18  ;;  %p1068_p12 = por (%p375_p8), %p1067_p11, %p1066_p10 }
 0x128   : > { %511 = vmatmul.mubr.f32.vlgmr.msra.gmra.mrb[0].mxu0 %v379_v28 }
 0x129   :  { %p1069_p13 = pnand (%p375_p8), %p1068_p12, %p1062_p9 }
 0x12a   : > { %973 = vmatpush3.bf16.msra.mxu1 %v972_v32 }
 0x12d   : > { %916 = vmatmul.mubr.f32.vlgmr.msra.gmra.mrb[0].mxu1 %v379_v28 }
 0x154   :  { %s977_s4 = spop (%p375_p8), %976 }
 0x155   :  { %v668_v22 = vstv (%p375_p8), %s977_s4 }
 0x187   : > { %v620_v58 = vpop.permute.xlu0 %619 }
 0x188   : > { %vm621_vm4 = vcmp.eq.s32.totalorder %v620_v58, 1 }
 0x1fb   : > { %v512_v36 = vpop.f32.mrb[0].mxu0 }
 0x1fc   : > { %v513_v38 = vadd.f32 %v512_v36, %v434_v34  ;;  %v514_v39 = vpop.f32.mrb[1].mxu0 }
 0x1fd   : > { %v515_v40 = vadd.f32 %v514_v39, %v438_v35 }
 0x1fe   : > { %v593_v18 = vadd.f32 %v590_v37, %v513_v38 }
 0x1ff   : > { %v600_v43 = vadd.f32 %v591_v41, %v515_v40 }
 0x200   : > { %v830_v42 = vmul.f32 -1.442695, %v593_v18  ;;  %v583_v44 = vpop.f32.mrb[0].mxu1 }
 0x201   : > { %v831_v45 = vmul.f32 -1.442695, %v600_v43  ;;  %v917_v46 = vpop.f32.mrb[1].mxu1  ;;  %v584_v52 = vadd.f32 %v583_v44, %v442_v49 }
 0x202   : > { %997 = vpow2.f32 %v830_v42 }
 0x203   : > { %999 = vpow2.f32 %v831_v45 }
 0x20c   : > { %v998_v47 = vpop.eup %997 }
 0x20d   : > { %v597_v48 = vadd.f32 1.0, %v998_v47  ;;  %v1000_v50 = vpop.eup %999 }
 0x20e   : > { %v604_v51 = vadd.f32 1.0, %v1000_v50 }
 0x20f   : > { %1001 = vrcp.f32 %v597_v48 }
 0x210   : > { %1003 = vrcp.f32 %v604_v51 }
 0x219   : > { %v1002_v53 = vpop.eup %1001 }
 0x21a   : > { %v607_v55 = vmul.f32 %v1002_v53, %v584_v52  ;;  %v1004_v57 = vpop.eup %1003 }
 0x21b   : > { %v610_v59 = vsub.f32 1.0, %v1004_v57  ;;  %v612_v62 = vmul.f32 %v1004_v57, %v379_v28 }
 0x21c   : > { %v608_v56 = vadd.f32 %v607_v55, %v592_v54 }
 0x21e   : > { %1005 = vtanh.f32 %v608_v56 }
 0x228   : > { %v1006_v60 = vpop.eup %1005  ;;  %377 = sbr.rel (!%p375_p8) target bundleno = 261 (0x105), region = 62 }
 0x229   : > { %v611_v61 = vmul.f32 %v1006_v60, %v610_v59  ;;  %v735_v59 = vand.u32 (%p375_p8), 127, %v308_v13 }
 0x22b   : > { %v613_v63 = vadd.f32 %v612_v62, %v611_v61 }
 0x22d   : > { %v622_v0 = vsel %vm621_vm4, %v613_v63, %v379_v28  ;;  %v624_v2 = vsel %vm621_vm4, %v613_v63, 0.0 }
 0x22e   : > { %623 = vst [vmem:[#allocation2] sm:$0xff] %v622_v0  ;;  %627 = vst [vmem:[%s626_s13] sm:$0xff] %v624_v2  ;;  %v738_v0 = vsub.s32 (%p375_p8), %v735_v59, %v1209_v14 }
 0x235   :  { %v630_v3 = vld [vmem:[#allocation3 + $0x10] sm:$0xff]  ;;  %v628_v5 = vld [vmem:[#allocation3] sm:$0xff]  ;;  %v631_v8 = vld [vmem:[#allocation3 + $0x18] sm:$0xff] }
 0x236   :  { %v643_v6 = vmul.f32 %v833_v4, %v630_v3  ;;  %v641_v7 = vmul.f32 %v833_v4, %v628_v5  ;;  %v629_v9 = vld [vmem:[#allocation3 + $0x8] sm:$0xff]  ;;  %v644_v10 = vmul.f32 %v833_v4, %v631_v8  ;;  %v632_v19 = vld [vmem:[#allocation3 + $0x20] sm:$0xff]  ;;  %v635_v17 = vld [vmem:[#allocation3 + $0x38] sm:$0xff] }
 0x237   :  { %v642_v11 = vmul.f32 %v833_v4, %v629_v9  ;;  %v633_v16 = vld [vmem:[#allocation3 + $0x28] sm:$0xff]  ;;  %v645_v15 = vmul.f32 %v833_v4, %v632_v19  ;;  %v634_v26 = vld [vmem:[#allocation3 + $0x30] sm:$0xff]  ;;  %v648_v20 = vmul.f32 %v833_v4, %v635_v17 }
 0x238   :  { %653 = vadd.xlane.f32.xlu1 %v643_v6  ;;  %649 = vadd.xlane.f32.xlu0 %v641_v7  ;;  %v646_v1 = vmul.f32 %v833_v4, %v633_v16  ;;  %v647_v21 = vmul.f32 %v833_v4, %v634_v26 }
 0x23c   :  { %655 = vadd.xlane.f32.xlu1 %v644_v10  ;;  %651 = vadd.xlane.f32.xlu0 %v642_v11 }
 0x240   :  { %659 = vadd.xlane.f32.xlu1 %v646_v1  ;;  %657 = vadd.xlane.f32.xlu0 %v645_v15 }
 0x244   :  { %663 = vadd.xlane.f32.xlu1 %v648_v20  ;;  %661 = vadd.xlane.f32.xlu0 %v647_v21 }
 0x2c5   :  { %v654_v23 = vpop.xlane.xlu1 %653  ;;  %v650_v24 = vpop.xlane.xlu0 %649 }
 0x2c6   :  { %v672_v25 = vadd.f32 %v668_v22, %v654_v23  ;;  %v670_v27 = vadd.f32 %v668_v22, %v650_v24 }
 0x2c8   :  { %v836_v28 = vmul.f32 -1.442695, %v672_v25  ;;  %v834_v29 = vmul.f32 -1.442695, %v670_v27 }
 0x2c9   :  { %v656_v30 = vpop.xlane.xlu1 %655  ;;  %v652_v31 = vpop.xlane.xlu0 %651 }
 0x2ca   :  { %1007 = vpow2.f32 %v836_v28  ;;  %v673_v32 = vadd.f32 %v668_v22, %v656_v30  ;;  %v671_v33 = vadd.f32 %v668_v22, %v652_v31 }
 0x2cb   :  { %1009 = vpow2.f32 %v834_v29 }
 0x2cc   :  { %v837_v34 = vmul.f32 -1.442695, %v673_v32  ;;  %v835_v35 = vmul.f32 -1.442695, %v671_v33 }
 0x2cd   :  { %v660_v36 = vpop.xlane.xlu1 %659  ;;  %v658_v37 = vpop.xlane.xlu0 %657 }
 0x2ce   :  { %1011 = vpow2.f32 %v837_v34  ;;  %v675_v38 = vadd.f32 %v668_v22, %v660_v36  ;;  %v674_v39 = vadd.f32 %v668_v22, %v658_v37 }
 0x2cf   :  { %1013 = vpow2.f32 %v835_v35 }
 0x2d0   :  { %v839_v40 = vmul.f32 -1.442695, %v675_v38  ;;  %v838_v18 = vmul.f32 -1.442695, %v674_v39 }
 0x2d1   :  { %v664_v41 = vpop.xlane.xlu1 %663  ;;  %v662_v42 = vpop.xlane.xlu0 %661 }
 0x2d2   :  { %1015 = vpow2.f32 %v839_v40  ;;  %v677_v43 = vadd.f32 %v668_v22, %v664_v41  ;;  %v676_v44 = vadd.f32 %v668_v22, %v662_v42 }
 0x2d3   :  { %1017 = vpow2.f32 %v838_v18 }
 0x2d4   :  { %v1008_v45 = vpop.eup %1007  ;;  %v841_v46 = vmul.f32 -1.442695, %v677_v43  ;;  %v840_v49 = vmul.f32 -1.442695, %v676_v44 }
 0x2d5   :  { %v1010_v47 = vpop.eup %1009  ;;  %v704_v48 = vadd.f32 1.0, %v1008_v45 }
 0x2d6   :  { %v702_v50 = vadd.f32 1.0, %v1010_v47  ;;  %1019 = vpow2.f32 %v841_v46 }
 0x2d7   :  { %1021 = vrcp.f32 %v704_v48 }
 0x2d8   :  { %v1012_v51 = vpop.eup %1011  ;;  %1023 = vpow2.f32 %v840_v49 }
 0x2d9   :  { %v1014_v52 = vpop.eup %1013  ;;  %v705_v53 = vadd.f32 1.0, %v1012_v51  ;;  %1025 = vrcp.f32 %v702_v50 }
 0x2da   :  { %v703_v54 = vadd.f32 1.0, %v1014_v52 }
 0x2db   :  { %1027 = vrcp.f32 %v705_v53 }
 0x2dc   :  { %v1016_v55 = vpop.eup %1015  ;;  %1029 = vrcp.f32 %v703_v54 }
 0x2dd   :  { %v1018_v56 = vpop.eup %1017  ;;  %v707_v57 = vadd.f32 1.0, %v1016_v55 }
 0x2de   :  { %v706_v58 = vadd.f32 1.0, %v1018_v56 }
 0x2e0   :  { %v1020_v60 = vpop.eup %1019  ;;  %1031 = vrcp.f32 %v706_v58 }
 0x2e1   :  { %1033 = vrcp.f32 %v707_v57  ;;  %v709_v61 = vadd.f32 1.0, %v1020_v60  ;;  %v1022_v62 = vpop.eup %1021 }
 0x2e2   :  { %v1024_v63 = vpop.eup %1023  ;;  %v747_v8 = vrot.slane %v1022_v62, %v738_v0 }
 0x2e3   :  { %1035 = vrcp.f32 %v709_v61  ;;  %v1026_v2 = vpop.eup %1025  ;;  %v708_v3 = vadd.f32 1.0, %v1024_v63 }
 0x2e4   :  { %v739_v6 = vrot.slane %v1026_v2, %v738_v0 }
 0x2e5   :  { %v1028_v4 = vpop.eup %1027  ;;  %1037 = vrcp.f32 %v708_v3 }
 0x2e6   :  { %v1030_v5 = vpop.eup %1029  ;;  %v751_v13 = vrot.slane %v1028_v4, %v738_v0 }
 0x2e7   :  { %v743_v7 = vrot.slane %v1030_v5, %v738_v0 }
 0x2e9   :  { %v769_v9 = vsel %vm768_vm5, %v743_v7, %v739_v6 }
 0x2ea   :  { %v1032_v10 = vpop.eup %1031  ;;  %v771_v11 = vsel %vm770_vm6, %v747_v8, %v769_v9 }
 0x2eb   :  { %v1034_v12 = vpop.eup %1033  ;;  %v755_v16 = vrot.slane %v1032_v10, %v738_v0  ;;  %v773_v19 = vsel %vm772_vm7, %v751_v13, %v771_v11 }
 0x2ec   :  { %v759_v1 = vrot.slane %v1034_v12, %v738_v0 }
 0x2ed   :  { %v1036_v14 = vpop.eup %1035  ;;  %v775_v15 = vsel %vm774_vm8, %v755_v16, %v773_v19 }
 0x2ee   :  { %v767_v26 = vrot.slane %v1036_v14, %v738_v0  ;;  %v777_v21 = vsel %vm776_vm9, %v759_v1, %v775_v15 }
 0x2ef   :  { %v1038_v17 = vpop.eup %1037 }
 0x2f0   :  { %v763_v20 = vrot.slane %v1038_v17, %v738_v0 }
 0x2f2   :  { %v779_v22 = vsel %vm778_vm10, %v763_v20, %v777_v21 }
 0x2f3   :  { %v781_v23 = vsel %vm780_vm11, %v767_v26, %v779_v22 }
 0x2f4   :  { %784 = vst.msk [vmem:[#allocation8] sm:$0xff] %vm783_vm12, %v781_v23 }
 0x2f5   :  { %1072 = shalt.err (!%p1069_p13)
}
 0x2f6   :  { %s1073_s20 = scalar_lea.hbm %s1298_s6, 128 }
 0x2f7   :  { %p1074_p0 = scmp.ne.s32.totalorder %s1298_s6, %s1073_s20  ;;  %p1077_p1 = scmp.lt.u32.totalorder %s1073_s20, %s1298_s6 }
 0x2f9   :  { %p1079_p2 = pnand %p1077_p1, %p1074_p0 }
 0x2fb   :  { %1082 = shalt.err (!%p1079_p2)
}
 0x2fc   :  { %794 = dma.vmem_to_hbm [thread:$0]  %s792_s17, 128, %s1298_s6, [#allocation7]  }
 0x2fd   :  { %1089 = dma.done.wait [#allocation7], 128  }
 0x2fe   :  { %1090 = vsyncadd [#allocation7], 4294967168 }
 0x2ff   :  { %798 = vsyncpa [#allocation6], 1 }
 0x300   :  { %799 = vsyncpa [#allocation7], 1 }

</bundles_post_ra>
